<compile_context>
chip_gen: v7x
topology: tpu7x:2x2x1
jax: 0.10.0
libtpu: 0.0.40
codegen_flags: <defaults>
</compile_context>

<pallas_src>
import jax
import jax.numpy as jnp
from jax.experimental import pallas as pl
from jax.experimental.pallas import tpu as pltpu


def _mlp_kernel(x_ref,
                w1_ref, b1_ref,
                w2_ref, b2_ref,
                w3_ref, b3_ref,
                o_ref):
    # Feature-major tiles: batch is the lane (last) dimension.
    xT = x_ref[...]                                                      # [6,  TB]

    # Linear(6,20) with BN(20) folded, then ReLU.
    h = jnp.dot(w1_ref[...], xT, preferred_element_type=jnp.float32)    # [20, TB]
    h = jnp.maximum(h + b1_ref[...], 0.0)

    # Linear(20,6) with BN(6) folded, then ReLU.
    h = jnp.dot(w2_ref[...], h, preferred_element_type=jnp.float32)     # [6,  TB]
    h = jnp.maximum(h + b2_ref[...], 0.0)

    # Linear(6,17).
    o = jnp.dot(w3_ref[...], h, preferred_element_type=jnp.float32)     # [17, TB]
    o_ref[...] = (o + b3_ref[...]).astype(o_ref.dtype)


def _round_up(v, m):
    return (v + m - 1) // m * m


def _cdiv(a, b):
    return (a + b - 1) // b


def multitask_neural_net_forward(x, params, *, tb_max=16384):
    """x: [B, *] flattened to [B, 6] (like x.view(x.size(0), -1)). Returns [B, 17].

    BatchNorm1d is applied in eval/inference mode (running statistics), matching
    "prediction with the pretrained models".
    """
    x = x.reshape(x.shape[0], -1).astype(jnp.float32)
    B = x.shape[0]
    if B == 0:  # guard: empty batch
        return jnp.zeros((0, 17), jnp.float32)

    (w1, b1, g1, be1, rm1, rv1,
     w2, b2, g2, be2, rm2, rv2,
     w3, b3) = params
    eps = 1e-5

    # Fold eval-mode BN into per-feature scale/shift, then into the linear
    # weights/biases; store everything transposed (feature-major).
    s1 = g1 / jnp.sqrt(rv1 + eps)
    t1 = be1 - rm1 * s1
    s2 = g2 / jnp.sqrt(rv2 + eps)
    t2 = be2 - rm2 * s2

    w1t = (w1 * s1[None, :]).T              # [20, 6]
    b1t = (b1 * s1 + t1)[:, None]           # [20, 1]
    w2t = (w2 * s2[None, :]).T              # [6, 20]
    b2t = (b2 * s2 + t2)[:, None]           # [6, 1]
    w3t = w3.T                              # [17, 6]
    b3t = b3[:, None]                       # [17, 1]

    # Feature-major activations: batch on the lane axis, padded only to a
    # multiple of 128 lanes (NOT to a full tile).
    Bp = _round_up(B, 128)
    xT = x.T                                # [6, B]
    if Bp != B:
        xT = jnp.pad(xT, ((0, 0), (0, Bp - B)))

    # Tile the batch (lane) axis.  Small batches: one tile.  Large batches: aim
    # for ~8 grid steps (v7x megacore sharding + pipelining) while keeping each
    # step's work >= 2048 rows to amortize the ~0.35us per-grid-step overhead.
    tb_max = max(128, (tb_max // 128) * 128)
    if Bp <= min(4096, tb_max):
        TB = Bp
    else:
        TB = min(tb_max, max(2048, _round_up(_cdiv(Bp, 8), 128)))
    grid = (_cdiv(Bp, TB),)                 # ragged last block handled by Pallas

    const = lambda i: (0, 0)
    in_specs = [
        pl.BlockSpec((6, TB), lambda i: (0, i)),     # x^T tile (lane-dense)
        pl.BlockSpec((20, 6), const), pl.BlockSpec((20, 1), const),
        pl.BlockSpec((6, 20), const), pl.BlockSpec((6, 1), const),
        pl.BlockSpec((17, 6), const), pl.BlockSpec((17, 1), const),
    ]
    out_spec = pl.BlockSpec((17, TB), lambda i: (0, i))  # lane-dense output

    # Advisory cost (honest numbers; actual bottleneck is MXU/VALU issue count
    # on tiny padded operands, which the feature-major layout minimizes).
    flops = 2 * Bp * (6 * 20 + 20 * 6 + 6 * 17)
    param_bytes = 4 * (20 * 6 + 20 + 6 * 20 + 6 + 17 * 6 + 17)
    bytes_accessed = Bp * (6 + 17) * 4 + param_bytes
    cost = pl.CostEstimate(flops=flops, transcendentals=0,
                           bytes_accessed=bytes_accessed)

    outT = pl.pallas_call(
        _mlp_kernel,
        out_shape=jax.ShapeDtypeStruct((17, Bp), jnp.float32),
        grid_spec=pltpu.PrefetchScalarGridSpec(
            num_scalar_prefetch=0,
            grid=grid,
            in_specs=in_specs,
            out_specs=out_spec,
        ),
        compiler_params=pltpu.CompilerParams(
            dimension_semantics=("parallel",)),
        cost_estimate=cost,
    )(xT, w1t, b1t, w2t, b2t, w3t, b3t)

    return outT[:, :B].T                    # back to batch-major [B, 17]


def init_params(key):
    """Deterministic synthetic parameters matching the module's shapes.
    Linear weights stored as [in, out] (transposed vs. PyTorch's [out, in])."""
    ks = jax.random.split(key, 6)

    def lin(kw, kb, fan_in, fan_out):
        bound = 1.0 / jnp.sqrt(fan_in)
        w = jax.random.uniform(kw, (fan_in, fan_out), jnp.float32, -bound, bound)
        b = jax.random.uniform(kb, (fan_out,), jnp.float32, -bound, bound)
        return w, b

    w1, b1 = lin(ks[0], ks[1], 6, 20)
    w2, b2 = lin(ks[2], ks[3], 20, 6)
    w3, b3 = lin(ks[4], ks[5], 6, 17)

    # BatchNorm1d buffers with non-trivial values so the fold is actually tested.
    g1 = 1.0 + 0.1 * jnp.arange(20, dtype=jnp.float32)
    be1 = 0.05 * jnp.arange(20, dtype=jnp.float32)
    rm1 = 0.02 * jnp.arange(20, dtype=jnp.float32)
    rv1 = 1.0 + 0.03 * jnp.arange(20, dtype=jnp.float32)
    g2 = 1.0 + 0.1 * jnp.arange(6, dtype=jnp.float32)
    be2 = 0.05 * jnp.arange(6, dtype=jnp.float32)
    rm2 = 0.02 * jnp.arange(6, dtype=jnp.float32)
    rv2 = 1.0 + 0.03 * jnp.arange(6, dtype=jnp.float32)

    return (w1, b1, g1, be1, rm1, rv1,
            w2, b2, g2, be2, rm2, rv2,
            w3, b3)


def _reference(x, params):
    (w1, b1, g1, be1, rm1, rv1,
     w2, b2, g2, be2, rm2, rv2,
     w3, b3) = params
    eps = 1e-5
    x = x.reshape(x.shape[0], -1)
    h = x @ w1 + b1
    h = (h - rm1) / jnp.sqrt(rv1 + eps) * g1 + be1
    h = jnp.maximum(h, 0.0)
    h = h @ w2 + b2
    h = (h - rm2) / jnp.sqrt(rv2 + eps) * g2 + be2
    h = jnp.maximum(h, 0.0)
    return h @ w3 + b3


if __name__ == "__main__":
    key = jax.random.PRNGKey(0)
    k_x, k_x2, k_x3, k_p = jax.random.split(key, 4)
    params = init_params(k_p)

    # Small batch: lanes padded 10 -> 128, single tile.
    B = 10
    x = jax.random.normal(k_x, (B, 6), dtype=jnp.float32)
    out = jax.block_until_ready(multitask_neural_net_forward(x, params))
    assert out.shape == (B, 17), out.shape
    assert out.dtype == jnp.float32
    ref = _reference(x, params)
    assert jnp.allclose(out, ref, atol=2e-3, rtol=2e-3), \
        float(jnp.max(jnp.abs(out - ref)))

    # Multi-tile path (grid=2, exact): exercises pipelining / VMEM-resident
    # parameters across grid steps and the parallel batch axis.
    B2 = 512
    x2 = jax.random.normal(k_x2, (B2, 6), dtype=jnp.float32)
    out2 = jax.block_until_ready(
        multitask_neural_net_forward(x2, params, tb_max=256))
    assert out2.shape == (B2, 17), out2.shape
    ref2 = _reference(x2, params)
    assert jnp.allclose(out2, ref2, atol=2e-3, rtol=2e-3), \
        float(jnp.max(jnp.abs(out2 - ref2)))

    # Ragged last block: Bp=384, TB=256, grid=2 (last block half out of bounds).
    B3 = 300
    x3 = jax.random.normal(k_x3, (B3, 6), dtype=jnp.float32)
    out3 = jax.block_until_ready(
        multitask_neural_net_forward(x3, params, tb_max=256))
    assert out3.shape == (B3, 17), out3.shape
    ref3 = _reference(x3, params)
    assert jnp.allclose(out3, ref3, atol=2e-3, rtol=2e-3), \
        float(jnp.max(jnp.abs(out3 - ref3)))

    print("KERNEL_OK")
</pallas_src>

<mosaic_0001>
module attributes {stable_mosaic.version = 11 : i64} {
  func.func @_mlp_kernel(%arg0: i32, %arg1: memref<6x128xf32, #tpu.memory_space<vmem>>, %arg2: memref<20x6xf32, #tpu.memory_space<vmem>>, %arg3: memref<20x1xf32, #tpu.memory_space<vmem>>, %arg4: memref<6x20xf32, #tpu.memory_space<vmem>>, %arg5: memref<6x1xf32, #tpu.memory_space<vmem>>, %arg6: memref<17x6xf32, #tpu.memory_space<vmem>>, %arg7: memref<17x1xf32, #tpu.memory_space<vmem>>, %arg8: memref<17x128xf32, #tpu.memory_space<vmem>>) attributes {dimension_semantics = [#tpu.dimension_semantics<parallel>], iteration_bounds = array<i64: 1>, scalar_prefetch = 0 : i64, scratch_operands = 0 : i64, tpu.core_type = #tpu.core_type<tc>, window_params = [{transform_indices = @transform_0, window_bounds = array<i64: 6, 128>}, {pipeline_mode = #tpu.pipeline_mode<synchronous>, transform_indices = @transform_1, window_bounds = array<i64: 20, 6>}, {pipeline_mode = #tpu.pipeline_mode<synchronous>, transform_indices = @transform_2, window_bounds = array<i64: 20, 1>}, {pipeline_mode = #tpu.pipeline_mode<synchronous>, transform_indices = @transform_3, window_bounds = array<i64: 6, 20>}, {pipeline_mode = #tpu.pipeline_mode<synchronous>, transform_indices = @transform_4, window_bounds = array<i64: 6, 1>}, {pipeline_mode = #tpu.pipeline_mode<synchronous>, transform_indices = @transform_5, window_bounds = array<i64: 17, 6>}, {pipeline_mode = #tpu.pipeline_mode<synchronous>, transform_indices = @transform_6, window_bounds = array<i64: 17, 1>}, {transform_indices = @transform_7, window_bounds = array<i64: 17, 128>}]} {
    %c0 = arith.constant 0 : index
    %c0_0 = arith.constant 0 : index
    %0 = vector.load %arg1[%c0, %c0_0] : memref<6x128xf32, #tpu.memory_space<vmem>>, vector<6x128xf32>
    %c0_1 = arith.constant 0 : index
    %c0_2 = arith.constant 0 : index
    %1 = vector.load %arg2[%c0_1, %c0_2] : memref<20x6xf32, #tpu.memory_space<vmem>>, vector<20x6xf32>
    %cst = arith.constant dense<0.000000e+00> : vector<20x128xf32>
    %2 = tpu.matmul %1, %0, %cst {dimension_numbers = #tpu.dot_dimension_numbers<[1], [0], [0], [1], [0, 0, 1, 1], [], []>} : vector<20x6xf32>, vector<6x128xf32>, vector<20x128xf32> -> vector<20x128xf32>
    %c0_3 = arith.constant 0 : index
    %c0_4 = arith.constant 0 : index
    %3 = vector.load %arg3[%c0_3, %c0_4] : memref<20x1xf32, #tpu.memory_space<vmem>>, vector<20x1xf32>
    %4 = vector.broadcast %3 : vector<20x1xf32> to vector<20x128xf32>
    %5 = arith.addf %2, %4 : vector<20x128xf32>
    %cst_5 = arith.constant 0.000000e+00 : f32
    %6 = vector.broadcast %cst_5 : f32 to vector<20x128xf32>
    %7 = arith.maximumf %5, %6 : vector<20x128xf32>
    %c0_6 = arith.constant 0 : index
    %c0_7 = arith.constant 0 : index
    %8 = vector.load %arg4[%c0_6, %c0_7] : memref<6x20xf32, #tpu.memory_space<vmem>>, vector<6x20xf32>
    %cst_8 = arith.constant dense<0.000000e+00> : vector<6x128xf32>
    %9 = tpu.matmul %8, %7, %cst_8 {dimension_numbers = #tpu.dot_dimension_numbers<[1], [0], [0], [1], [0, 0, 1, 1], [], []>} : vector<6x20xf32>, vector<20x128xf32>, vector<6x128xf32> -> vector<6x128xf32>
    %c0_9 = arith.constant 0 : index
    %c0_10 = arith.constant 0 : index
    %10 = vector.load %arg5[%c0_9, %c0_10] : memref<6x1xf32, #tpu.memory_space<vmem>>, vector<6x1xf32>
    %11 = vector.broadcast %10 : vector<6x1xf32> to vector<6x128xf32>
    %12 = arith.addf %9, %11 : vector<6x128xf32>
    %cst_11 = arith.constant 0.000000e+00 : f32
    %13 = vector.broadcast %cst_11 : f32 to vector<6x128xf32>
    %14 = arith.maximumf %12, %13 : vector<6x128xf32>
    %c0_12 = arith.constant 0 : index
    %c0_13 = arith.constant 0 : index
    %15 = vector.load %arg6[%c0_12, %c0_13] : memref<17x6xf32, #tpu.memory_space<vmem>>, vector<17x6xf32>
    %cst_14 = arith.constant dense<0.000000e+00> : vector<17x128xf32>
    %16 = tpu.matmul %15, %14, %cst_14 {dimension_numbers = #tpu.dot_dimension_numbers<[1], [0], [0], [1], [0, 0, 1, 1], [], []>} : vector<17x6xf32>, vector<6x128xf32>, vector<17x128xf32> -> vector<17x128xf32>
    %c0_15 = arith.constant 0 : index
    %c0_16 = arith.constant 0 : index
    %17 = vector.load %arg7[%c0_15, %c0_16] : memref<17x1xf32, #tpu.memory_space<vmem>>, vector<17x1xf32>
    %18 = vector.broadcast %17 : vector<17x1xf32> to vector<17x128xf32>
    %19 = arith.addf %16, %18 : vector<17x128xf32>
    %c0_17 = arith.constant 0 : index
    %c0_18 = arith.constant 0 : index
    %20 = vector.load %arg8[%c0_17, %c0_18] : memref<17x128xf32, #tpu.memory_space<vmem>>, vector<17x128xf32>
    tpu.vector_store %arg8[%c0_17, %c0_18], %19 {strides = array<i32>} : memref<17x128xf32, #tpu.memory_space<vmem>>, vector<17x128xf32>,
    return
  }
  func.func @transform_0(%arg0: i32) -> (i32, i32) {
    %c0_i32 = arith.constant 0 : i32
    %c0_i32_0 = arith.constant 0 : i32
    return %c0_i32, %arg0 : i32, i32
  }
  func.func @transform_1(%arg0: i32) -> (i32, i32) {
    %c0_i32 = arith.constant 0 : i32
    %c0_i32_0 = arith.constant 0 : i32
    %c0_i32_1 = arith.constant 0 : i32
    return %c0_i32, %c0_i32_0 : i32, i32
  }
  func.func @transform_2(%arg0: i32) -> (i32, i32) {
    %c0_i32 = arith.constant 0 : i32
    %c0_i32_0 = arith.constant 0 : i32
    %c0_i32_1 = arith.constant 0 : i32
    return %c0_i32, %c0_i32_0 : i32, i32
  }
  func.func @transform_3(%arg0: i32) -> (i32, i32) {
    %c0_i32 = arith.constant 0 : i32
    %c0_i32_0 = arith.constant 0 : i32
    %c0_i32_1 = arith.constant 0 : i32
    return %c0_i32, %c0_i32_0 : i32, i32
  }
  func.func @transform_4(%arg0: i32) -> (i32, i32) {
    %c0_i32 = arith.constant 0 : i32
    %c0_i32_0 = arith.constant 0 : i32
    %c0_i32_1 = arith.constant 0 : i32
    return %c0_i32, %c0_i32_0 : i32, i32
  }
  func.func @transform_5(%arg0: i32) -> (i32, i32) {
    %c0_i32 = arith.constant 0 : i32
    %c0_i32_0 = arith.constant 0 : i32
    %c0_i32_1 = arith.constant 0 : i32
    return %c0_i32, %c0_i32_0 : i32, i32
  }
  func.func @transform_6(%arg0: i32) -> (i32, i32) {
    %c0_i32 = arith.constant 0 : i32
    %c0_i32_0 = arith.constant 0 : i32
    %c0_i32_1 = arith.constant 0 : i32
    return %c0_i32, %c0_i32_0 : i32, i32
  }
  func.func @transform_7(%arg0: i32) -> (i32, i32) {
    %c0_i32 = arith.constant 0 : i32
    %c0_i32_0 = arith.constant 0 : i32
    return %c0_i32, %arg0 : i32, i32
  }
}

</mosaic_0001>

<bundles_post_ra>
// kernel: tpu_custom_call.1
= control target key start
LH: loop header
LB: loop body
LE: loop exit
PB: predicated region body
PF: predicated region fallthrough
CT: control target
= control target key end

     0   :  { %vm59_vm0 = vcmask 1045504   ;;  %v453_v2 = vmov 0.0   ;;  %vm454_vm1 = vmmov 0   ;;  %vm49_vm2 = vcmask 48128   ;;  %s582_s0 = inlined_call_operand.vmem [shape: f32[6,128], index: 0, kind: input, shape index: {}]   ;;  %s583_s1 = inlined_call_operand.vmem [shape: f32[20,6], index: 1, kind: input, shape index: {}]   ;;  %s584_s2 = inlined_call_operand.vmem [shape: f32[20,1], index: 2, kind: input, shape index: {}]   ;;  %s585_s3 = inlined_call_operand.vmem [shape: f32[6,20], index: 3, kind: input, shape index: {}]   ;;  %s586_s4 = inlined_call_operand.vmem [shape: f32[6,1], index: 4, kind: input, shape index: {}]   ;;  %s587_s5 = inlined_call_operand.vmem [shape: f32[17,6], index: 5, kind: input, shape index: {}]   ;;  %s588_s6 = inlined_call_operand.vmem [shape: f32[17,1], index: 6, kind: input, shape index: {}]   ;;  %s589_s7 = inlined_call_operand.hbm [shape: f32[17,128], index: 7, kind: output, shape index: {}]  }
   0x1   :  { %v27_v0 = vld [vmem:[%s582_s0] sm:$0x3f]  ;;  %386 = vmatprep.subr.mxu0 %v453_v2  ;;  %388 = vmatprep.mubr.msk.f32.mxu0 %vm454_vm1, %v453_v2  ;;  %v455_v4 = vmov 0   ;;  %v33_v5 = vld [vmem:[%s584_s2 + $0x10] sm:$0xf]  ;;  %v29_v6 = vld [vmem:[%s583_s1 + $0x8] sm:$0xff] }
   0x2   :  { %v28_v1 = vld [vmem:[%s583_s1] sm:$0xff]  ;;  %387 = vmatpush3.msk.msra.mxu0 %vm59_vm0, %v27_v0  ;;  %427 = vset.pattern.permute.xlu0 %v455_v4  ;;  %v32_v7 = vld [vmem:[%s584_s2 + $0x8] sm:$0xff] }
   0x3   :  { %v31_v3 = vld [vmem:[%s584_s2] sm:$0xff]  ;;  %389 = vmatmul.mubr.msk.f32.vlgmr.msra.gmra.mrb[0].mxu0 %vm49_vm2, %v28_v1  ;;  %428 = vset.pattern.permute.xlu1 %v455_v4 }
   0x4   :  { %36 = vperm.xlu0 %427, %v31_v3   ;;  %391 = vmatprep.mubr.msk.f32.mxu0 %vm454_vm1, %v453_v2 }
   0x5   :  { %12 = vsyncpa [#allocation3], 0  ;;  %46 = vperm.xlu1 %428, %v33_v5   ;;  %406 = vmatprep.subr.mxu1 %v453_v2  ;;  %v147_v8 = vld [vmem:[%s586_s4] sm:$0x3f]  ;;  %v30_v9 = vld [vmem:[%s583_s1 + $0x10] sm:$0xf] }
   0x6   :  { %408 = vmatprep.mubr.msk.f32.mxu1 %vm454_vm1, %v453_v2  ;;  %v235_v10 = vld [vmem:[%s588_s6] sm:$0xff]  ;;  %v236_v11 = vld [vmem:[%s588_s6 + $0x8] sm:$0xff]  ;;  %v237_v12 = vld [vmem:[%s588_s6 + $0x10] sm:$0x1]  ;;  %v456_v13 = vmov 0.0|0.0   ;;  %vm157_vm3 = vcmask 1043456  }
   0x7   :  { %392 = vmatmul.mubr.msk.f32.gmra.mrb[2].mxu0 %vm49_vm2, %v29_v6  ;;  %417 = vmatprep.subr.bf16.mxu0 %v456_v13  ;;  %v146_v30 = vld [vmem:[%s585_s3] sm:$0x3f]  ;;  %vm153_vm4 = vcmask 162816   ;;  %v233_v37 = vld [vmem:[%s587_s5 + $0x8] sm:$0xff]  ;;  %v234_v38 = vld [vmem:[%s587_s5 + $0x10] sm:$0x1] }
   0x8   :  { %41 = vperm.xlu0 %427, %v32_v7   ;;  %394 = vmatprep.mubr.msk.f32.mxu0 %vm454_vm1, %v453_v2  ;;  %v232_v36 = vld [vmem:[%s587_s5] sm:$0xff]  ;;  %s457_s25 = smov [#allocation2]  }
   0x9   :  { %150 = vperm.xlu1 %428, %v147_v8   ;;  %s353_s26 = sshll.u32 %s457_s25, 4  ;;  %s354_s26 = int_to_ptr.vmem [resolvable:$true] %s353_s26 }
   0xa   :  { %s429_s5 = scalar_lea.vmem %s354_s26, 384  ;;  %p434_p1 = scmp.lt.s32.totalorder %s354_s26, %s354_s26 }
   0xb   :  { %395 = vmatmul.mubr.msk.f32.gmra.mrb[4].mxu0 %vm49_vm2, %v30_v9  ;;  %p430_p0 = scmp.ne.s32.totalorder %s354_s26, %s429_s5  ;;  %p435_p2 = scmp.lt.s32.totalorder %s429_s5, %s429_s5 }
   0xc   :  { %240 = vperm.xlu0 %427, %v235_v10   ;;  %403 = vmatprep.mubr.msk.f32.mxu0 %vm454_vm1, %v453_v2 }
   0xd   :  { %245 = vperm.xlu1 %428, %v236_v11   ;;  %p436_p3 = por %p435_p2, %p434_p1 }
   0xf   :  { %p437_p4 = pnand %p436_p3, %p430_p0 }
  0x10   :  { %250 = vperm.xlu0 %427, %v237_v12  }
  0x83   :  { %v37_v14 = vpop.permute.xlu0 %36 }
  0x84   :  { %v47_v24 = vpop.permute.xlu1 %46 }
  0x87   :  { %v42_v18 = vpop.permute.xlu0 %41 }
  0x88   :  { %v151_v31 = vpop.permute.xlu1 %150 }
  0x8b   :  { %v241_v39 = vpop.permute.xlu0 %240 }
  0x8c   :  { %v246_v43 = vpop.permute.xlu1 %245 }
  0x8f   :  { %v251_v47 = vpop.permute.xlu0 %250 }
  0xd6   :  { %v129_v15 = vpop.f32.mrb[0].mxu0 }
  0xd7   :  { %v390_v16 = vpop.f32.mrb[1].mxu0  ;;  %v130_v17 = vadd.f32 %v129_v15, %v37_v14 }
  0xd9   :  { %v143_v22 = vmax.f32 %v130_v17, 0.0 }
  0xda   :  { %v134_v19 = vpop.f32.mrb[2].mxu0 }
  0xdb   :  { %v135_v20 = vadd.f32 %v134_v19, %v42_v18  ;;  %v393_v21 = vpop.f32.mrb[3].mxu0 }
  0xdd   :  { %v144_v23 = vmax.f32 %v135_v20, 0.0 }
  0xde   :  { %v139_v25 = vpop.f32.mrb[4].mxu0 }
  0xdf   :  { %v418_v26 = vpack.c.bf16 %v144_v23, %v143_v22  ;;  %v140_v27 = vadd.f32 %v139_v25, %v47_v24  ;;  %v396_v28 = vpop.f32.mrb[5].mxu0 }
  0xe1   :  { %v145_v29 = vmax.f32 %v140_v27, 0.0  ;;  %419 = vmatpush3.bf16.msra.mxu0 %v418_v26 }
  0xe2   :  { %401 = vmatprep.subr.mxu0 %v453_v2 }
  0xe5   :  { %402 = vmatpush3.msk.msra.mxu0 %vm157_vm3, %v145_v29 }
  0xe6   :  { %404 = vmatmul.mubr.msk.f32.vlgmr.msra.gmra.mrb[6].mxu0 %vm153_vm4, %v146_v30 }
 0x1b9   :  { %v227_v32 = vpop.f32.mrb[6].mxu0 }
 0x1ba   :  { %v228_v33 = vadd.f32 %v227_v32, %v151_v31  ;;  %v405_v34 = vpop.f32.mrb[7].mxu0 }
 0x1bc   :  { %v231_v35 = vmax.f32 %v228_v33, 0.0 }
 0x1be   :  { %407 = vmatpush3.msk.msra.mxu1 %vm59_vm0, %v231_v35 }
 0x1bf   :  { %409 = vmatmul.mubr.msk.f32.vlgmr.msra.gmra.mrb[0].mxu1 %vm49_vm2, %v232_v36 }
 0x1c0   :  { %411 = vmatprep.mubr.msk.f32.mxu1 %vm454_vm1, %v453_v2 }
 0x1c3   :  { %412 = vmatmul.mubr.msk.f32.gmra.mrb[2].mxu1 %vm49_vm2, %v233_v37 }
 0x1c4   :  { %414 = vmatprep.mubr.msk.f32.mxu1 %vm454_vm1, %v453_v2 }
 0x1c7   :  { %415 = vmatmul.mubr.msk.f32.gmra.mrb[4].mxu1 %vm49_vm2, %v234_v38 }
 0x292   :  { %v331_v40 = vpop.f32.mrb[0].mxu1 }
 0x293   :  { %v332_v41 = vadd.f32 %v331_v40, %v241_v39  ;;  %v410_v42 = vpop.f32.mrb[1].mxu1 }
 0x295   :  { %345 = vst [vmem:[#allocation2] sm:$0xff] %v332_v41 }
 0x296   :  { %v336_v44 = vpop.f32.mrb[2].mxu1 }
 0x297   :  { %v337_v45 = vadd.f32 %v336_v44, %v246_v43  ;;  %v413_v46 = vpop.f32.mrb[3].mxu1 }
 0x299   :  { %346 = vst [vmem:[#allocation2 + $0x8] sm:$0xff] %v337_v45 }
 0x29a   :  { %v341_v48 = vpop.f32.mrb[4].mxu1 }
 0x29b   :  { %v342_v49 = vadd.f32 %v341_v48, %v251_v47  ;;  %v416_v50 = vpop.f32.mrb[5].mxu1 }
 0x29d   :  { %347 = vst [vmem:[#allocation2 + $0x10] sm:$0x1] %v342_v49 }
 0x29e   :  { %440 = shalt.err (!%p437_p4)
}
 0x29f   :  { %s441_s29 = scalar_lea.hbm %s589_s7, 384 }
 0x2a0   :  { %p442_p5 = scmp.ne.s32.totalorder %s589_s7, %s441_s29  ;;  %p445_p6 = scmp.lt.u32.totalorder %s441_s29, %s589_s7 }
 0x2a2   :  { %p447_p7 = pnand %p445_p6, %p442_p5 }
 0x2a4   :  { %450 = shalt.err (!%p447_p7)
}
 0x2a5   :  { %s458_s10 = smov 128   ;;  %s459_s11 = smov 8  }
 0x2a6   :  { %359 = dma.vmem_to_hbm [thread:$0]  %s354_s26, 384, %s589_s7, [#allocation3], %s458_s10, %s458_s10, %s459_s11  }
 0x2a7   :  { %451 = dma.done.wait [#allocation3], 384  }
 0x2a8   :  { %452 = vsyncadd [#allocation3], 4294966912 }
 0x2a9   :  { %363 = vsyncpa [#allocation3], 1 }

</bundles_post_ra>
